<compile_context>
chip_gen: v6e
topology: v6e:2x2x1
jax: 0.10.0
libtpu: 0.0.40
codegen_flags: <defaults>
</compile_context>

<pallas_src>
import jax
import jax.numpy as jnp
from jax.experimental import pallas as pl
from jax.experimental.pallas import tpu as pltpu

INC = 4          # inC
KSIZE = 3        # kernel_size
OUTC = 3         # outC
HIDDEN = 256
OUT_DIM = KSIZE * KSIZE * INC * OUTC   # 108 (true output features)
OUT_PAD = 128                          # lane-dense padded output width


def _round_up(x, m):
    return ((x + m - 1) // m) * m


def pos2weight_kernel(x_ref, w1_ref, b1_ref, w2_ref, b2_ref, o_ref):
    # x tile: (tm, 2); weights are full (replicated across grid steps).
    x = x_ref[...].astype(jnp.float32)
    w1 = w1_ref[...]

    # ---- Layer 1: degenerate K=2 contraction as two VPU broadcast FMAs ----
    h = x[:, 0:1] * w1[0:1, :] + x[:, 1:2] * w1[1:2, :] + b1_ref[...]
    h = jnp.maximum(h, 0.0)                                   # ReLU

    # ---- Layer 2: (tm, 256) @ (256, 128) on the MXU, f32 accumulate ----
    y = jnp.dot(h.astype(w2_ref.dtype), w2_ref[...],
                preferred_element_type=jnp.float32)
    y = y + b2_ref[...].astype(jnp.float32)

    o_ref[...] = y.astype(o_ref.dtype)


def pos2weight(x, w1, b1, w2, b2, *, tm=2048, out_dtype=None,
               compute_dtype=jnp.float32):
    """x: (N, 2); w1: (2, 256); b1: (1, 256); w2: (256, 108); b2: (1, 108).

    Returns (N, 108). Rows are tiled by `tm`; N is padded to a tile multiple
    and the output feature dim is padded to 128 lanes inside the call, then
    sliced back.
    """
    n = x.shape[0]
    out_dtype = out_dtype or x.dtype

    # Clamp the tile so tiny problems don't over-pad, keep it a multiple of 8.
    tm = max(8, min(tm, _round_up(n, 8)))
    n_pad = pl.cdiv(n, tm) * tm
    if n_pad != n:
        x = jnp.pad(x, ((0, n_pad - n), (0, 0)))

    # Lane-dense (128-wide) second-layer weights / bias.
    w2p = jnp.pad(w2.astype(compute_dtype), ((0, 0), (0, OUT_PAD - OUT_DIM)))
    b2p = jnp.pad(b2.astype(jnp.float32), ((0, 0), (0, OUT_PAD - OUT_DIM)))

    grid = (n_pad // tm,)
    out = pl.pallas_call(
        pos2weight_kernel,
        out_shape=jax.ShapeDtypeStruct((n_pad, OUT_PAD), out_dtype),
        grid=grid,
        in_specs=[
            pl.BlockSpec((tm, 2), lambda i: (i, 0)),            # x row tile
            pl.BlockSpec((2, HIDDEN), lambda i: (0, 0)),        # W1 (full)
            pl.BlockSpec((1, HIDDEN), lambda i: (0, 0)),        # b1
            pl.BlockSpec((HIDDEN, OUT_PAD), lambda i: (0, 0)),  # W2 (padded)
            pl.BlockSpec((1, OUT_PAD), lambda i: (0, 0)),       # b2 (padded)
        ],
        out_specs=pl.BlockSpec((tm, OUT_PAD), lambda i: (i, 0)),
        compiler_params=pltpu.CompilerParams(
            dimension_semantics=("parallel",)),
    )(x, w1, b1, w2p, b2p)

    # Strip the row padding and the lane padding back to the true 108 features.
    return out[:n, :OUT_DIM]


def init_params(key):
    """Deterministic init mimicking nn.Linear default: U(-1/sqrt(fan_in), ...)."""
    k1, k2, k3, k4 = jax.random.split(key, 4)
    bound1 = 1.0 / jnp.sqrt(2.0)
    bound2 = 1.0 / jnp.sqrt(float(HIDDEN))
    w1 = jax.random.uniform(k1, (2, HIDDEN), jnp.float32, -bound1, bound1)
    b1 = jax.random.uniform(k2, (1, HIDDEN), jnp.float32, -bound1, bound1)
    w2 = jax.random.uniform(k3, (HIDDEN, OUT_DIM), jnp.float32, -bound2, bound2)
    b2 = jax.random.uniform(k4, (1, OUT_DIM), jnp.float32, -bound2, bound2)
    return w1, b1, w2, b2


def reference(x, w1, b1, w2, b2):
    h = jnp.maximum(x @ w1 + b1, 0.0)
    return h @ w2 + b2


if __name__ == "__main__":
    key = jax.random.PRNGKey(0)
    kx, kp = jax.random.split(key)

    # Small synthetic test: N positions (scale^2 * H * W flattened in real use).
    # N is deliberately not a multiple of the tile to exercise the padding path;
    # tm=256 keeps the demo small while still producing a multi-step grid.
    N = 1000
    x = jax.random.uniform(kx, (N, 2), jnp.float32)  # relative (dy, dx) positions
    w1, b1, w2, b2 = init_params(kp)

    out = pos2weight(x, w1, b1, w2, b2, tm=256)
    out = jax.block_until_ready(out)

    ref = reference(x, w1, b1, w2, b2)
    assert out.shape == (N, OUT_DIM)
    assert jnp.allclose(out, ref, atol=2e-5, rtol=2e-5), "mismatch vs JAX reference"

    print("KERNEL_OK")
</pallas_src>

<mosaic_0001>
module attributes {stable_mosaic.version = 11 : i64} {
  func.func @pos2weight_kernel(%arg0: i32, %arg1: memref<256x2xf32, #tpu.memory_space<vmem>>, %arg2: memref<2x256xf32, #tpu.memory_space<vmem>>, %arg3: memref<1x256xf32, #tpu.memory_space<vmem>>, %arg4: memref<256x128xf32, #tpu.memory_space<vmem>>, %arg5: memref<1x128xf32, #tpu.memory_space<vmem>>, %arg6: memref<256x128xf32, #tpu.memory_space<vmem>>) attributes {dimension_semantics = [#tpu.dimension_semantics<parallel>], iteration_bounds = array<i64: 4>, scalar_prefetch = 0 : i64, scratch_operands = 0 : i64, tpu.core_type = #tpu.core_type<tc>, window_params = [{transform_indices = @transform_0, window_bounds = array<i64: 256, 2>}, {pipeline_mode = #tpu.pipeline_mode<synchronous>, transform_indices = @transform_1, window_bounds = array<i64: 2, 256>}, {pipeline_mode = #tpu.pipeline_mode<synchronous>, transform_indices = @transform_2, window_bounds = array<i64: 1, 256>}, {pipeline_mode = #tpu.pipeline_mode<synchronous>, transform_indices = @transform_3, window_bounds = array<i64: 256, 128>}, {pipeline_mode = #tpu.pipeline_mode<synchronous>, transform_indices = @transform_4, window_bounds = array<i64: 1, 128>}, {transform_indices = @transform_5, window_bounds = array<i64: 256, 128>}]} {
    %c0 = arith.constant 0 : index
    %c0_0 = arith.constant 0 : index
    %0 = vector.load %arg1[%c0, %c0_0] : memref<256x2xf32, #tpu.memory_space<vmem>>, vector<256x2xf32>
    %c0_1 = arith.constant 0 : index
    %c0_2 = arith.constant 0 : index
    %1 = vector.load %arg2[%c0_1, %c0_2] : memref<2x256xf32, #tpu.memory_space<vmem>>, vector<2x256xf32>
    %2 = vector.extract_strided_slice %0 {offsets = [0, 0], sizes = [256, 1], strides = [1, 1]} : vector<256x2xf32> to vector<256x1xf32>
    %3 = vector.extract_strided_slice %1 {offsets = [0, 0], sizes = [1, 256], strides = [1, 1]} : vector<2x256xf32> to vector<1x256xf32>
    %4 = vector.broadcast %2 : vector<256x1xf32> to vector<256x256xf32>
    %5 = vector.broadcast %3 : vector<1x256xf32> to vector<256x256xf32>
    %6 = arith.mulf %4, %5 : vector<256x256xf32>
    %7 = vector.extract_strided_slice %0 {offsets = [0, 1], sizes = [256, 1], strides = [1, 1]} : vector<256x2xf32> to vector<256x1xf32>
    %8 = vector.extract_strided_slice %1 {offsets = [1, 0], sizes = [1, 256], strides = [1, 1]} : vector<2x256xf32> to vector<1x256xf32>
    %9 = vector.broadcast %7 : vector<256x1xf32> to vector<256x256xf32>
    %10 = vector.broadcast %8 : vector<1x256xf32> to vector<256x256xf32>
    %11 = arith.mulf %9, %10 : vector<256x256xf32>
    %12 = arith.addf %6, %11 : vector<256x256xf32>
    %c0_3 = arith.constant 0 : index
    %c0_4 = arith.constant 0 : index
    %13 = vector.load %arg3[%c0_3, %c0_4] : memref<1x256xf32, #tpu.memory_space<vmem>>, vector<1x256xf32>
    %14 = vector.broadcast %13 : vector<1x256xf32> to vector<256x256xf32>
    %15 = arith.addf %12, %14 : vector<256x256xf32>
    %cst = arith.constant 0.000000e+00 : f32
    %16 = vector.broadcast %cst : f32 to vector<256x256xf32>
    %17 = arith.maximumf %15, %16 : vector<256x256xf32>
    %c0_5 = arith.constant 0 : index
    %c0_6 = arith.constant 0 : index
    %18 = vector.load %arg4[%c0_5, %c0_6] : memref<256x128xf32, #tpu.memory_space<vmem>>, vector<256x128xf32>
    %cst_7 = arith.constant dense<0.000000e+00> : vector<256x128xf32>
    %19 = tpu.matmul %17, %18, %cst_7 {dimension_numbers = #tpu.dot_dimension_numbers<[1], [0], [0], [1], [0, 0, 1, 1], [], []>} : vector<256x256xf32>, vector<256x128xf32>, vector<256x128xf32> -> vector<256x128xf32>
    %c0_8 = arith.constant 0 : index
    %c0_9 = arith.constant 0 : index
    %20 = vector.load %arg5[%c0_8, %c0_9] : memref<1x128xf32, #tpu.memory_space<vmem>>, vector<1x128xf32>
    %21 = vector.broadcast %20 : vector<1x128xf32> to vector<256x128xf32>
    %22 = arith.addf %19, %21 : vector<256x128xf32>
    %c0_10 = arith.constant 0 : index
    %c0_11 = arith.constant 0 : index
    %23 = vector.load %arg6[%c0_10, %c0_11] : memref<256x128xf32, #tpu.memory_space<vmem>>, vector<256x128xf32>
    tpu.vector_store %arg6[%c0_10, %c0_11], %22 {strides = array<i32>} : memref<256x128xf32, #tpu.memory_space<vmem>>, vector<256x128xf32>,
    return
  }
  func.func @transform_0(%arg0: i32) -> (i32, i32) {
    %c0_i32 = arith.constant 0 : i32
    %c0_i32_0 = arith.constant 0 : i32
    return %arg0, %c0_i32 : i32, i32
  }
  func.func @transform_1(%arg0: i32) -> (i32, i32) {
    %c0_i32 = arith.constant 0 : i32
    %c0_i32_0 = arith.constant 0 : i32
    %c0_i32_1 = arith.constant 0 : i32
    return %c0_i32, %c0_i32_0 : i32, i32
  }
  func.func @transform_2(%arg0: i32) -> (i32, i32) {
    %c0_i32 = arith.constant 0 : i32
    %c0_i32_0 = arith.constant 0 : i32
    %c0_i32_1 = arith.constant 0 : i32
    return %c0_i32, %c0_i32_0 : i32, i32
  }
  func.func @transform_3(%arg0: i32) -> (i32, i32) {
    %c0_i32 = arith.constant 0 : i32
    %c0_i32_0 = arith.constant 0 : i32
    %c0_i32_1 = arith.constant 0 : i32
    return %c0_i32, %c0_i32_0 : i32, i32
  }
  func.func @transform_4(%arg0: i32) -> (i32, i32) {
    %c0_i32 = arith.constant 0 : i32
    %c0_i32_0 = arith.constant 0 : i32
    %c0_i32_1 = arith.constant 0 : i32
    return %c0_i32, %c0_i32_0 : i32, i32
  }
  func.func @transform_5(%arg0: i32) -> (i32, i32) {
    %c0_i32 = arith.constant 0 : i32
    %c0_i32_0 = arith.constant 0 : i32
    return %arg0, %c0_i32 : i32, i32
  }
}

</mosaic_0001>

<bundles_post_ra>
// kernel: tpu_custom_call.1
= control target key start
LH: loop header
LB: loop body
LE: loop exit
PB: predicated region body
PF: predicated region fallthrough
CT: control target
= control target key end

     0   :  { %10 = vsyncpa [#allocation3], 0  ;;  %s2233_s0 = inlined_call_operand.vmem [shape: f32[1024,2], index: 0, kind: input, shape index: {}]   ;;  %s2234_s1 = inlined_call_operand.vmem [shape: f32[2,256], index: 1, kind: input, shape index: {}]   ;;  %s2235_s2 = inlined_call_operand.vmem [shape: f32[1,256], index: 2, kind: input, shape index: {}]   ;;  %s2236_s3 = inlined_call_operand.vmem [shape: f32[256,128], index: 3, kind: input, shape index: {}]   ;;  %s2237_s4 = inlined_call_operand.vmem [shape: f32[1,128], index: 4, kind: input, shape index: {}]   ;;  %s2238_s5 = inlined_call_operand.hbm [shape: f32[1024,128], index: 5, kind: output, shape index: {}]  }
   0x1   :  { %12 = vsyncpa [#allocation3 + $0x1], 0  ;;  %s1542_s18 = smov 0   ;;  %s1544_s19 = smov 0  }
   0x2   :  { %s1546_s20 = smov 0   ;;  %s1548_s21 = smov 0  }
   0x3 LB: > { %s1563_s22 = sadd.s32 4294967295, %s1504_s21   ;;  %s1288_s23 = sadd.s32 4294967294, %s1504_s21   ;;  %s1504_s21 = sphi %s1548_s21, %s2244_s21   ;;  %s1500_s20 = sphi %s1546_s20, %s2243_s20   ;;  %s1496_s19 = sphi %s1544_s19, %s2242_s19   ;;  %s1492_s18 = sphi %s1542_s18, %s2241_s18  }
   0x4   : > { %s1567_s24 = sadd.s32 1, %s1504_s21   ;;  %s135_s25 = sadd.s32 1, %s1500_s20 }
   0x5   : > { %s132_s26 = ssub.s32 %s1504_s21, %s1567_s24  ;;  %p145_p0 = scmp.ne.s32.totalorder %s1500_s20, %s1496_s19 }
   0x6   : > { %p133_p1 = scmp.eq.s32.totalorder %s132_s26, 0  ;;  %p146_p2 = scmp.eq.s32.totalorder %s1563_s22, 3 }
   0x7   : > { %p151_p3 = scmp.ne.s32.totalorder %s1496_s19, %s1492_s18  ;;  %p152_p4 = scmp.eq.s32.totalorder %s1288_s23, 3 }
   0x8   : > { %s1578_s27 = scalar_select %p133_p1, %s1500_s20, %s135_s25  }
   0x9   : > { %p1580_p5 = por %p146_p2, %p145_p0  ;;  %p1584_p6 = por %p152_p4, %p151_p3 }
   0xa   : > { %p1291_p7 = scmp.ge.s32.totalorder %s1504_s21, 1  ;;  %p191_p8 = scmp.lt.s32.totalorder %s1504_s21, 5 }
   0xc   : > { %p192_p9 = pnand %p1291_p7, %p191_p8 }
   0xd   : > { %s1293_s30 = sshll.u32 (!%p192_p9), %s1563_s22, 5  ;;  %s1301_s6 = sshll.u32 (!%p192_p9), %s1563_s22, 12 }
   0xe   : > { %195 = sbr.rel (%p192_p9) target bundleno = 551 (0x227), region = 40  ;;  %p220_p10 = scmp.lt.s32.totalorder (!%p192_p9), %s1293_s30, 127 }
   0xf   : > { %s2185_s10 = scalar_lea.hbm (!%p192_p9), %s2238_s5, %s1301_s6 }
  0x13   : > { %v931_v0 = vld [vmem:[%s2236_s3 + $0x78] sm:$0xff]  ;;  %v1506_v1 = vmov 1   ;;  %v1507_v2 = vmov 0.0   ;;  %v930_v3 = vld [vmem:[%s2236_s3 + $0x70] sm:$0xff]  ;;  %s2246_s30 = smov (!%p220_p10, %s1293_s30), 127  ;;  %v929_v4 = vld [vmem:[%s2236_s3 + $0x68] sm:$0xff] }
  0x14   : > { %1412 = vset.pattern.permute.xlu0 %v1506_v1  ;;  %1410 = vset.pattern.permute.xlu1 %v1506_v1  ;;  %s1294_s12 = sshll.u32 %s2246_s30, 3  ;;  %v928_v7 = vld [vmem:[%s2236_s3 + $0x60] sm:$0xff]  ;;  %v927_v10 = vld [vmem:[%s2236_s3 + $0x58] sm:$0xff]  ;;  %v926_v11 = vld [vmem:[%s2236_s3 + $0x50] sm:$0xff]  ;;  %v1508_v15 = vmov 0  }
  0x15   : > { %955 = vmatprep.subr.mxu0 %v1507_v2  ;;  %1302 = vmatprep.subr.mxu1 %v1507_v2  ;;  %s1609_s15 = scalar_lea.vmem %s2233_s0, %s1294_s12  ;;  %v925_v14 = vld [vmem:[%s2236_s3 + $0x48] sm:$0xff]  ;;  %v924_v17 = vld [vmem:[%s2236_s3 + $0x40] sm:$0xff]  ;;  %v923_v18 = vld [vmem:[%s2236_s3 + $0x38] sm:$0xff]  ;;  %s1509_s12 = smov [#allocation2]  }
  0x16   : > { %956 = vmatpush1.msra.mxu0 %v931_v0  ;;  %1334 = vmatpush1.msra.mxu1 %v931_v0  ;;  %v1614_v5 = vld [vmem:[%s1609_s15 + $0x8] sm:$0xff]  ;;  %v1617_v6 = vld [vmem:[%s1609_s15] sm:$0xff]  ;;  %v1625_v8 = vld [vmem:[%s1609_s15 + $0x18] sm:$0xff]  ;;  %s1448_s13 = sshll.u32 %s1509_s12, 4  ;;  %s1449_s13 = int_to_ptr.vmem [resolvable:$false] %s1448_s13 }
  0x17   : > { %957 = vmatprep.subr.mxu0 %v1507_v2  ;;  %1303 = vmatprep.subr.mxu1 %v1507_v2  ;;  %v1628_v9 = vld [vmem:[%s1609_s15 + $0x80] sm:$0xff]  ;;  %v1643_v12 = vld [vmem:[%s1609_s15 + $0x28] sm:$0xff]  ;;  %v1654_v16 = vld [vmem:[%s1609_s15 + $0x38] sm:$0xff]  ;;  %s1450_s14 = scalar_lea.vmem %s1449_s13, 8192 }
  0x18   : > { %958 = vmatpush1.msra.mxu0 %v930_v3  ;;  %1335 = vmatpush1.msra.mxu1 %v930_v3  ;;  %v243_v13 = vld [vmem:[%s1609_s15 + $0x88] sm:$0xff]  ;;  %v922_v20 = vld [vmem:[%s2236_s3 + $0x30] sm:$0xff]  ;;  %v1679_v22 = vld [vmem:[%s1609_s15 + $0x58] sm:$0xff] }
  0x19   : > { %959 = vmatprep.subr.mxu0 %v1507_v2  ;;  %1304 = vmatprep.subr.mxu1 %v1507_v2  ;;  %v1668_v19 = vld [vmem:[%s1609_s15 + $0x48] sm:$0xff]  ;;  %v228_v21 = vld [vmem:[%s1609_s15 + $0x10] sm:$0xff]  ;;  %v920_v24 = vld [vmem:[%s2236_s3 + $0x20] sm:$0xff] }
  0x1a   : > { %960 = vmatpush1.msra.mxu0 %v929_v4  ;;  %1336 = vmatpush1.msra.mxu1 %v929_v4  ;;  %v921_v23 = vld [vmem:[%s2236_s3 + $0x28] sm:$0xff]  ;;  %v919_v26 = vld [vmem:[%s2236_s3 + $0x18] sm:$0xff]  ;;  %v244_v27 = vld [vmem:[%s1609_s15 + $0x90] sm:$0xff] }
  0x1b   : > { %507 = vperm.xlu0 %1412, %v1614_v5   ;;  %503 = vperm.xlu1 %1410, %v1617_v6   ;;  %v1692_v25 = vld [vmem:[%s1609_s15 + $0x68] sm:$0xff]  ;;  %v918_v28 = vld [vmem:[%s2236_s3 + $0x10] sm:$0xff]  ;;  %v245_v30 = vld [vmem:[%s1609_s15 + $0x98] sm:$0xff] }
  0x1c   : > { %961 = vmatprep.subr.mxu0 %v1507_v2  ;;  %1305 = vmatprep.subr.mxu1 %v1507_v2  ;;  %v917_v29 = vld [vmem:[%s2236_s3 + $0x8] sm:$0xff]  ;;  %v916_v31 = vld [vmem:[%s2236_s3] sm:$0xff]  ;;  %v947_v32 = vld [vmem:[%s2236_s3 + $0xf8] sm:$0xff] }
  0x1d   : > { %962 = vmatpush1.msra.mxu0 %v928_v7  ;;  %1337 = vmatpush1.msra.mxu1 %v928_v7  ;;  %v946_v33 = vld [vmem:[%s2236_s3 + $0xf0] sm:$0xff]  ;;  %v230_v34 = vld [vmem:[%s1609_s15 + $0x20] sm:$0xff]  ;;  %v945_v35 = vld [vmem:[%s2236_s3 + $0xe8] sm:$0xff] }
  0x1e   : > { %963 = vmatprep.subr.mxu0 %v1507_v2  ;;  %1306 = vmatprep.subr.mxu1 %v1507_v2  ;;  %v944_v36 = vld [vmem:[%s2236_s3 + $0xe0] sm:$0xff]  ;;  %v943_v38 = vld [vmem:[%s2236_s3 + $0xd8] sm:$0xff]  ;;  %v942_v39 = vld [vmem:[%s2236_s3 + $0xd0] sm:$0xff] }
  0x1f   : > { %515 = vperm.xlu0 %1412, %v1625_v8   ;;  %567 = vperm.xlu1 %1410, %v1628_v9   ;;  %v246_v37 = vld [vmem:[%s1609_s15 + $0xa0] sm:$0xff]  ;;  %v941_v40 = vld [vmem:[%s2236_s3 + $0xc8] sm:$0xff]  ;;  %v248_v41 = vld [vmem:[%s1609_s15 + $0xb0] sm:$0xff] }
  0x20   : > { %964 = vmatpush1.msra.mxu0 %v927_v10  ;;  %1338 = vmatpush1.msra.mxu1 %v927_v10  ;;  %v247_v42 = vld [vmem:[%s1609_s15 + $0xa8] sm:$0xff]  ;;  %v940_v43 = vld [vmem:[%s2236_s3 + $0xc0] sm:$0xff]  ;;  %v939_v44 = vld [vmem:[%s2236_s3 + $0xb8] sm:$0xff] }
  0x21   : > { %965 = vmatprep.subr.mxu0 %v1507_v2  ;;  %1307 = vmatprep.subr.mxu1 %v1507_v2  ;;  %v938_v45 = vld [vmem:[%s2236_s3 + $0xb0] sm:$0xff]  ;;  %v1786_v46 = vld [vmem:[%s1609_s15 + $0xc0] sm:$0xff]  ;;  %v937_v48 = vld [vmem:[%s2236_s3 + $0xa8] sm:$0xff] }
  0x22   : > { %966 = vmatpush1.msra.mxu0 %v926_v11  ;;  %1339 = vmatpush1.msra.mxu1 %v926_v11  ;;  %v232_v47 = vld [vmem:[%s1609_s15 + $0x30] sm:$0xff]  ;;  %v936_v49 = vld [vmem:[%s2236_s3 + $0xa0] sm:$0xff]  ;;  %v935_v51 = vld [vmem:[%s2236_s3 + $0x98] sm:$0xff] }
  0x23   : > { %523 = vperm.xlu0 %1412, %v1643_v12   ;;  %1411 = vset.pattern.permute.xlu1 %v1508_v15  ;;  %v252_v50 = vld [vmem:[%s1609_s15 + $0xd0] sm:$0xff]  ;;  %v933_v53 = vld [vmem:[%s2236_s3 + $0x88] sm:$0xff]  ;;  %v1823_v54 = vld [vmem:[%s1609_s15 + $0xe0] sm:$0xff] }
  0x24   : > { %346 = vperm.xlu1 %1411, %v243_v13   ;;  %967 = vmatprep.subr.mxu0 %v1507_v2  ;;  %v934_v52 = vld [vmem:[%s2236_s3 + $0x90] sm:$0xff]  ;;  %v249_v55 = vld [vmem:[%s1609_s15 + $0xb8] sm:$0xff]  ;;  %v932_v56 = vld [vmem:[%s2236_s3 + $0x80] sm:$0xff] }
  0x25   : > { %968 = vmatpush1.msra.mxu0 %v925_v14  ;;  %1308 = vmatprep.subr.mxu1 %v1507_v2  ;;  %v1838_v57 = vld [vmem:[%s1609_s15 + $0xf0] sm:$0xff]  ;;  %v234_v58 = vld [vmem:[%s1609_s15 + $0x40] sm:$0xff]  ;;  %v241_v59 = vld [vmem:[%s1609_s15 + $0x78] sm:$0xff] }
  0x26   : > { %969 = vmatprep.subr.mxu0 %v1507_v2  ;;  %1340 = vmatpush1.msra.mxu1 %v925_v14  ;;  %v251_v60 = vld [vmem:[%s1609_s15 + $0xc8] sm:$0xff]  ;;  %v236_v61 = vld [vmem:[%s1609_s15 + $0x50] sm:$0xff]  ;;  %v253_v0 = vld [vmem:[%s1609_s15 + $0xd8] sm:$0xff] }
  0x27   : > { %531 = vperm.xlu0 %1412, %v1654_v16   ;;  %970 = vmatpush1.msra.mxu0 %v924_v17  ;;  %v258_v14 = vld [vmem:[%s2234_s1] sm:$0xf] }
  0x28   : > { %1413 = vset.pattern.permute.xlu1 %v1506_v1  ;;  %971 = vmatprep.subr.mxu0 %v1507_v2 }
  0x29   : > { %571 = vperm.xlu1 %1413, %v243_v13   ;;  %972 = vmatpush1.msra.mxu0 %v923_v18 }
  0x2a   : > { %1309 = vmatprep.subr.mxu1 %v1507_v2  ;;  %973 = vmatprep.subr.mxu0 %v1507_v2 }
  0x2b   : > { %539 = vperm.xlu0 %1412, %v1668_v19   ;;  %1341 = vmatpush1.msra.mxu1 %v924_v17 }
  0x2c   : > { %974 = vmatpush1.msra.mxu0 %v922_v20  ;;  %1310 = vmatprep.subr.mxu1 %v1507_v2 }
  0x2d   : > { %1414 = vset.pattern.permute.xlu1 %v1508_v15  ;;  %975 = vmatprep.subr.mxu0 %v1507_v2 }
  0x2e   : > { %271 = vperm.xlu1 %1414, %v228_v21   ;;  %1342 = vmatpush1.msra.mxu1 %v923_v18 }
  0x2f   : > { %547 = vperm.xlu0 %1412, %v1679_v22   ;;  %976 = vmatpush1.msra.mxu0 %v921_v23 }
  0x30   : > { %1311 = vmatprep.subr.mxu1 %v1507_v2  ;;  %977 = vmatprep.subr.mxu0 %v1507_v2 }
  0x31   : > { %1343 = vmatpush1.msra.mxu1 %v922_v20  ;;  %978 = vmatpush1.msra.mxu0 %v920_v24 }
  0x32   : > { %1415 = vset.pattern.permute.xlu1 %v1506_v1  ;;  %1312 = vmatprep.subr.mxu1 %v1507_v2 }
  0x33   : > { %555 = vperm.xlu0 %1412, %v1692_v25   ;;  %511 = vperm.xlu1 %1415, %v228_v21  }
  0x34   : > { %979 = vmatprep.subr.mxu0 %v1507_v2  ;;  %1344 = vmatpush1.msra.mxu1 %v921_v23 }
  0x35   : > { %980 = vmatpush1.msra.mxu0 %v919_v26  ;;  %1313 = vmatprep.subr.mxu1 %v1507_v2 }
  0x36   : > { %981 = vmatprep.subr.mxu0 %v1507_v2  ;;  %1345 = vmatpush1.msra.mxu1 %v920_v24 }
  0x37   : > { %1437 = vset.pattern.permute.xlu0 %v1508_v15  ;;  %575 = vperm.xlu1 %1415, %v244_v27  }
  0x38   : > { %261 = vperm.xlu0 %1437, %v1617_v6   ;;  %982 = vmatpush1.msra.mxu0 %v918_v28 }
  0x39   : > { %1314 = vmatprep.subr.mxu1 %v1507_v2  ;;  %983 = vmatprep.subr.mxu0 %v1507_v2 }
  0x3a   : > { %1346 = vmatpush1.msra.mxu1 %v919_v26  ;;  %984 = vmatpush1.msra.mxu0 %v917_v29 }
  0x3b   : > { %1416 = vset.pattern.permute.xlu1 %v1508_v15  ;;  %1315 = vmatprep.subr.mxu1 %v1507_v2 }
  0x3c   : > { %341 = vperm.xlu0 %1437, %v1628_v9   ;;  %356 = vperm.xlu1 %1416, %v245_v30   ;;  %v238_v9 = vld [vmem:[%s1609_s15 + $0x60] sm:$0xff] }
  0x3d   : > { %985 = vmatprep.subr.mxu0 %v1507_v2  ;;  %1347 = vmatpush1.msra.mxu1 %v918_v28 }
  0x3e   : > { %986 = vmatpush1.msra.mxu0 %v916_v31  ;;  %1316 = vmatprep.subr.mxu1 %v1507_v2 }
  0x3f   : > { %987 = vmatprep.subr.mxu0 %v1507_v2  ;;  %1348 = vmatpush1.msra.mxu1 %v917_v29 }
  0x40   : > { %266 = vperm.xlu0 %1437, %v1614_v5   ;;  %1417 = vset.pattern.permute.xlu1 %v1506_v1  ;;  %v420_v5 = vlaneseq }
  0x41   : > { %579 = vperm.xlu1 %1417, %v245_v30   ;;  %988 = vmatpush2.msra.mxu0 %v947_v32  ;;  %v255_v30 = vld [vmem:[%s1609_s15 + $0xe8] sm:$0xff] }
  0x42   : > { %1317 = vmatprep.subr.mxu1 %v1507_v2  ;;  %989 = vmatprep.subr.mxu0 %v1507_v2 }
  0x43   : > { %1349 = vmatpush1.msra.mxu1 %v916_v31  ;;  %990 = vmatpush2.msra.mxu0 %v946_v33 }
  0x44   : > { %351 = vperm.xlu0 %1437, %v244_v27   ;;  %1318 = vmatprep.subr.mxu1 %v1507_v2 }
  0x45   : > { %1418 = vset.pattern.permute.xlu1 %v1508_v15  ;;  %991 = vmatprep.subr.mxu0 %v1507_v2 }
  0x46   : > { %281 = vperm.xlu1 %1418, %v230_v34   ;;  %1350 = vmatpush2.msra.mxu1 %v947_v32 }
  0x47   : > { %992 = vmatpush2.msra.mxu0 %v945_v35  ;;  %1319 = vmatprep.subr.mxu1 %v1507_v2 }
  0x48   : > { %276 = vperm.xlu0 %1437, %v1625_v8   ;;  %993 = vmatprep.subr.mxu0 %v1507_v2  ;;  %v421_v8 = vshrl.u32 %v420_v5, 7 }
  0x49   : > { %1351 = vmatpush2.msra.mxu1 %v946_v33  ;;  %994 = vmatpush2.msra.mxu0 %v944_v36 }
  0x4a   : > { %1419 = vset.pattern.permute.xlu1 %v1506_v1  ;;  %1320 = vmatprep.subr.mxu1 %v1507_v2  ;;  %v636_v13 = vsub.s32 3, %v421_v8  ;;  %v426_v17 = vsub.s32 2, %v421_v8 }
  0x4b   : > { %519 = vperm.xlu1 %1419, %v230_v34   ;;  %995 = vmatprep.subr.mxu0 %v1507_v2  ;;  %v776_v34 = vld [vmem:[%s2235_s2] sm:$0x3] }
  0x4c   : > { %361 = vperm.xlu0 %1437, %v246_v37   ;;  %1352 = vmatpush2.msra.mxu1 %v945_v35  ;;  %v637_v21 = vrot.slane %v258_v14, %v636_v13  ;;  %v427_v23 = vrot.slane %v258_v14, %v426_v17  ;;  %v240_v13 = vld [vmem:[%s1609_s15 + $0x70] sm:$0xff] }
  0x4d   : > { %996 = vmatpush2.msra.mxu0 %v943_v38  ;;  %1321 = vmatprep.subr.mxu1 %v1507_v2 }
  0x4e   : > { %997 = vmatprep.subr.mxu0 %v1507_v2  ;;  %1353 = vmatpush2.msra.mxu1 %v944_v36 }
  0x4f   : > { %583 = vperm.xlu1 %1419, %v246_v37   ;;  %998 = vmatpush2.msra.mxu0 %v942_v39 }
  0x50   : > { %286 = vperm.xlu0 %1437, %v1643_v12   ;;  %1322 = vmatprep.subr.mxu1 %v1507_v2  ;;  %v632_v12 = vsub.s32 1, %v421_v8 }
  0x51   : > { %999 = vmatprep.subr.mxu0 %v1507_v2  ;;  %1354 = vmatpush2.msra.mxu1 %v943_v38 }
  0x52   : > { %1000 = vmatpush2.msra.mxu0 %v941_v40  ;;  %1323 = vmatprep.subr.mxu1 %v1507_v2  ;;  %v633_v20 = vrot.slane %v258_v14, %v632_v12  ;;  %v1878_v27 = vrot.slane %v637_v21, %v632_v12 }
  0x53   : > { %1420 = vset.pattern.permute.xlu1 %v1508_v15  ;;  %1001 = vmatprep.subr.mxu0 %v1507_v2 }
  0x54   : > { %371 = vperm.xlu0 %1437, %v248_v41   ;;  %366 = vperm.xlu1 %1420, %v247_v42   ;;  %v1876_v26 = vrot.slane %v633_v20, %v632_v12 }
  0x55   : > { %1355 = vmatpush2.msra.mxu1 %v942_v39  ;;  %1002 = vmatpush2.msra.mxu0 %v940_v43 }
  0x56   : > { %1324 = vmatprep.subr.mxu1 %v1507_v2  ;;  %1003 = vmatprep.subr.mxu0 %v1507_v2 }
  0x57   : > { %1356 = vmatpush2.msra.mxu1 %v941_v40  ;;  %1004 = vmatpush2.msra.mxu0 %v939_v44 }
  0x58   : > { %296 = vperm.xlu0 %1437, %v1654_v16   ;;  %1421 = vset.pattern.permute.xlu1 %v1506_v1  ;;  %v422_v16 = vsub.s32 0, %v421_v8 }
  0x59   : > { %587 = vperm.xlu1 %1421, %v247_v42   ;;  %1325 = vmatprep.subr.mxu1 %v1507_v2 }
  0x5a   : > { %1005 = vmatprep.subr.mxu0 %v1507_v2  ;;  %1357 = vmatpush2.msra.mxu1 %v940_v43  ;;  %v1883_v29 = vrot.slane %v427_v23, %v422_v16  ;;  %v1898_v42 = vrot.slane %v776_v34, %v422_v16  ;;  %v1900_v43 = vrot.slane %v776_v34, %v632_v12 }
  0x5b   : > { %1006 = vmatpush2.msra.mxu0 %v938_v45  ;;  %1326 = vmatprep.subr.mxu1 %v1507_v2 }
  0x5c   : > { %381 = vperm.xlu0 %1437, %v1786_v46   ;;  %1007 = vmatprep.subr.mxu0 %v1507_v2 }
  0x5d   : > { %1422 = vset.pattern.permute.xlu1 %v1508_v15  ;;  %1358 = vmatpush2.msra.mxu1 %v939_v44 }
  0x5e   : > { %291 = vperm.xlu1 %1422, %v232_v47   ;;  %1008 = vmatpush2.msra.mxu0 %v937_v48 }
  0x5f   : > { %1327 = vmatprep.subr.mxu1 %v1507_v2  ;;  %1009 = vmatprep.subr.mxu0 %v1507_v2 }
  0x60   : > { %306 = vperm.xlu0 %1437, %v1668_v19   ;;  %1359 = vmatpush2.msra.mxu1 %v938_v45 }
  0x61   : > { %1010 = vmatpush2.msra.mxu0 %v936_v49  ;;  %1328 = vmatprep.subr.mxu1 %v1507_v2 }
  0x62   : > { %1423 = vset.pattern.permute.xlu1 %v1506_v1  ;;  %1011 = vmatprep.subr.mxu0 %v1507_v2 }
  0x63   : > { %527 = vperm.xlu1 %1423, %v232_v47   ;;  %1360 = vmatpush2.msra.mxu1 %v937_v48 }
  0x64   : > { %391 = vperm.xlu0 %1437, %v252_v50   ;;  %1012 = vmatpush2.msra.mxu0 %v935_v51 }
  0x65   : > { %1329 = vmatprep.subr.mxu1 %v1507_v2  ;;  %1013 = vmatprep.subr.mxu0 %v1507_v2 }
  0x66   : > { %1361 = vmatpush2.msra.mxu1 %v936_v49  ;;  %1014 = vmatpush2.msra.mxu0 %v934_v52 }
  0x67   : > { %591 = vperm.xlu1 %1423, %v248_v41   ;;  %1330 = vmatprep.subr.mxu1 %v1507_v2 }
  0x68   : > { %316 = vperm.xlu0 %1437, %v1679_v22   ;;  %1015 = vmatprep.subr.mxu0 %v1507_v2  ;;  %v423_v22 = vrot.slane %v258_v14, %v422_v16 }
  0x69   : > { %1362 = vmatpush2.msra.mxu1 %v935_v51  ;;  %1016 = vmatpush2.msra.mxu0 %v933_v53 }
  0x6a   : > { %1331 = vmatprep.subr.mxu1 %v1507_v2  ;;  %1017 = vmatprep.subr.mxu0 %v1507_v2  ;;  %v1881_v28 = vrot.slane %v423_v22, %v422_v16 }
  0x6b   : > { %1424 = vset.pattern.permute.xlu1 %v1508_v15  ;;  %1363 = vmatpush2.msra.mxu1 %v934_v52 }
  0x6c   : > { %401 = vperm.xlu0 %1437, %v1823_v54   ;;  %376 = vperm.xlu1 %1424, %v249_v55  }
  0x6d   : > { %1018 = vmatpush2.msra.mxu0 %v932_v56  ;;  %1332 = vmatprep.subr.mxu1 %v1507_v2 }
  0x6e   : > { %1364 = vmatpush2.msra.mxu1 %v933_v53 }
  0x6f   : > { %1333 = vmatprep.subr.mxu1 %v1507_v2 }
  0x70   : > { %326 = vperm.xlu0 %1437, %v1692_v25   ;;  %1425 = vset.pattern.permute.xlu1 %v1506_v1 }
  0x71   : > { %595 = vperm.xlu1 %1425, %v249_v55   ;;  %1365 = vmatpush2.msra.mxu1 %v932_v56 }
  0x74   : > { %411 = vperm.xlu0 %1437, %v1838_v57  }
  0x75   : > { %1426 = vset.pattern.permute.xlu1 %v1508_v15 }
  0x76   : > { %301 = vperm.xlu1 %1426, %v234_v58  }
  0x78   : > { %336 = vperm.xlu0 %1437, %v241_v59  }
  0x7a   : > { %1427 = vset.pattern.permute.xlu1 %v1506_v1 }
  0x7b   : > { %535 = vperm.xlu1 %1427, %v234_v58  }
  0x7c   : > { %1442 = vset.pattern.permute.xlu0 %v1506_v1 }
  0x7d   : > { %563 = vperm.xlu0 %1442, %v241_v59  }
  0x7f   : > { %599 = vperm.xlu1 %1427, %v1786_v46  }
  0x83   : > { %1428 = vset.pattern.permute.xlu1 %v1508_v15 }
  0x84   : > { %386 = vperm.xlu1 %1428, %v251_v60  }
  0x88   : > { %1429 = vset.pattern.permute.xlu1 %v1506_v1 }
  0x89   : > { %603 = vperm.xlu1 %1429, %v251_v60  }
  0x8d   : > { %1430 = vset.pattern.permute.xlu1 %v1508_v15 }
  0x8e   : > { %311 = vperm.xlu1 %1430, %v236_v61  }
  0x92   : > { %1431 = vset.pattern.permute.xlu1 %v1506_v1 }
  0x93   : > { %543 = vperm.xlu1 %1431, %v236_v61  }
  0x96   : > { %v504_v62 = vpop.permute.xlu1 %503  ;;  %v508_v63 = vpop.permute.xlu0 %507 }
  0x97   : > { %607 = vperm.xlu1 %1431, %v252_v50   ;;  %v648_v35 = vmul.f32 %v1876_v26, %v504_v62  ;;  %v649_v36 = vmul.f32 %v1878_v27, %v504_v62  ;;  %v650_v48 = vmul.f32 %v1876_v26, %v508_v63  ;;  %v651_v49 = vmul.f32 %v1878_v27, %v508_v63 }
  0x9a   : > { %v1854_v2 = vpop.permute.xlu1 %567  ;;  %v1856_v3 = vpop.permute.xlu0 %515 }
  0x9b   : > { %1432 = vset.pattern.permute.xlu1 %v1508_v15  ;;  %v681_v55 = vmul.f32 %v1878_v27, %v1854_v2 }
  0x9c   : > { %396 = vperm.xlu1 %1432, %v253_v0  }
  0x9e   : > { %v1859_v4 = vpop.permute.xlu0 %523 }
  0x9f   : > { %v347_v6 = vpop.permute.xlu1 %346 }
  0xa0   : > { %1433 = vset.pattern.permute.xlu1 %v1506_v1  ;;  %v472_v38 = vmul.f32 %v1881_v28, %v347_v6  ;;  %v473_v39 = vmul.f32 %v1883_v29, %v347_v6 }
  0xa1   : > { %611 = vperm.xlu1 %1433, %v253_v0  }
  0xa2   : > { %v1862_v7 = vpop.permute.xlu0 %531 }
  0xa4   : > { %v572_v10 = vpop.permute.xlu1 %571 }
  0xa5   : > { %1434 = vset.pattern.permute.xlu1 %v1508_v15  ;;  %v682_v31 = vmul.f32 %v1876_v26, %v572_v10  ;;  %v683_v32 = vmul.f32 %v1878_v27, %v572_v10 }
  0xa6   : > { %321 = vperm.xlu1 %1434, %v238_v9   ;;  %v1866_v11 = vpop.permute.xlu0 %539 }
  0xa7   : > { %v746_v44 = vadd.f32 %v682_v31, %v472_v38  ;;  %v747_v45 = vadd.f32 %v683_v32, %v473_v39 }
  0xa9   : > { %v272_v18 = vpop.permute.xlu1 %271  ;;  %v822_v5 = vadd.f32 %v1898_v42, %v746_v44 }
  0xaa   : > { %1435 = vset.pattern.permute.xlu1 %v1506_v1  ;;  %v1872_v19 = vpop.permute.xlu0 %547  ;;  %v442_v59 = vmul.f32 %v1881_v28, %v272_v18  ;;  %v443_v60 = vmul.f32 %v1883_v29, %v272_v18 }
  0xab   : > { %551 = vperm.xlu1 %1435, %v238_v9  }
  0xae   : > { %v512_v24 = vpop.permute.xlu1 %511  ;;  %v1874_v25 = vpop.permute.xlu0 %555 }
  0xaf   : > { %615 = vperm.xlu1 %1435, %v1823_v54   ;;  %v652_v50 = vmul.f32 %v1876_v26, %v512_v24  ;;  %v653_v51 = vmul.f32 %v1878_v27, %v512_v24  ;;  %v680_v54 = vmul.f32 %v1876_v26, %v1854_v2  ;;  %v823_v2 = vadd.f32 %v1900_v43, %v747_v45 }
  0xb0   : > { %v654_v45 = vmul.f32 %v1876_v26, %v1856_v3 }
  0xb1   : > { %v716_v6 = vadd.f32 %v652_v50, %v442_v59  ;;  %v717_v8 = vadd.f32 %v653_v51, %v443_v60 }
  0xb2   : > { %v576_v33 = vpop.permute.xlu1 %575 }
  0xb3   : > { %v262_v37 = vpop.permute.xlu0 %261  ;;  %1436 = vset.pattern.permute.xlu1 %v1508_v15  ;;  %v684_v34 = vmul.f32 %v1876_v26, %v576_v33 }
  0xb4   : > { %v438_v40 = vmul.f32 %v1881_v28, %v262_v37  ;;  %v439_v41 = vmul.f32 %v1883_v29, %v262_v37  ;;  %406 = vperm.xlu1 %1436, %v255_v30  }
  0xb6   : > { %v712_v46 = vadd.f32 %v648_v35, %v438_v40  ;;  %v713_v47 = vadd.f32 %v649_v36, %v439_v41  ;;  %v685_v35 = vmul.f32 %v1878_v27, %v576_v33  ;;  %v887_v33 = vmax.f32 %v823_v2, 0.0 }
  0xb7   : > { %v342_v52 = vpop.permute.xlu0 %341  ;;  %v357_v53 = vpop.permute.xlu1 %356 }
  0xb8   : > { %v470_v56 = vmul.f32 %v1881_v28, %v342_v52  ;;  %v471_v58 = vmul.f32 %v1883_v29, %v342_v52  ;;  %1438 = vset.pattern.permute.xlu1 %v1506_v1  ;;  %v789_v61 = vadd.f32 %v1900_v43, %v713_v47  ;;  %v788_v62 = vadd.f32 %v1898_v42, %v712_v46 }
  0xb9   : > { %619 = vperm.xlu1 %1438, %v255_v30   ;;  %v477_v21 = vmul.f32 %v1883_v29, %v357_v53  ;;  %v476_v36 = vmul.f32 %v1881_v28, %v357_v53  ;;  %v886_v52 = vmax.f32 %v822_v5, 0.0 }
  0xba   : > { %v744_v63 = vadd.f32 %v680_v54, %v470_v56  ;;  %v745_v0 = vadd.f32 %v681_v55, %v471_v58  ;;  %v853_v10 = vmax.f32 %v789_v61, 0.0  ;;  %v852_v12 = vmax.f32 %v788_v62, 0.0 }
  0xbb   : > { %v267_v9 = vpop.permute.xlu0 %266  ;;  %v792_v56 = vadd.f32 %v1898_v42, %v716_v6 }
  0xbc   : > { %v440_v14 = vmul.f32 %v1881_v28, %v267_v9  ;;  %v441_v16 = vmul.f32 %v1883_v29, %v267_v9  ;;  %v580_v17 = vpop.permute.xlu1 %579  ;;  %v821_v18 = vadd.f32 %v1900_v43, %v745_v0  ;;  %v820_v20 = vadd.f32 %v1898_v42, %v744_v63  ;;  %1019 = vmatprep.mubr.f32.mxu0 %v853_v10 }
  0xbd   : > { %v686_v22 = vmul.f32 %v1876_v26, %v580_v17  ;;  %v687_v23 = vmul.f32 %v1878_v27, %v580_v17  ;;  %1439 = vset.pattern.permute.xlu1 %v1508_v15  ;;  %1020 = vmatmul.mubr.f32.vlgmr.msra.gmra.mxu0 %v852_v12 }
  0xbe   : > { %v714_v24 = vadd.f32 %v650_v48, %v440_v14  ;;  %v715_v30 = vadd.f32 %v651_v49, %v441_v16  ;;  %331 = vperm.xlu1 %1439, %v240_v13   ;;  %v885_v31 = vmax.f32 %v821_v18, 0.0  ;;  %v884_v32 = vmax.f32 %v820_v20, 0.0 }
  0xbf   : > { %v751_v37 = vadd.f32 %v687_v23, %v477_v21  ;;  %v352_v38 = vpop.permute.xlu0 %351  ;;  %v750_v46 = vadd.f32 %v686_v22, %v476_v36  ;;  %v793_v48 = vadd.f32 %v1900_v43, %v717_v8  ;;  %v655_v49 = vmul.f32 %v1878_v27, %v1856_v3 }
  0xc0   : > { %v474_v39 = vmul.f32 %v1881_v28, %v352_v38  ;;  %v475_v40 = vmul.f32 %v1883_v29, %v352_v38  ;;  %1099 = vmatprep.mubr.f32.mxu1 %v885_v31  ;;  %v791_v41 = vadd.f32 %v1900_v43, %v715_v30  ;;  %v790_v44 = vadd.f32 %v1898_v42, %v714_v24  ;;  %v257_v30 = vld [vmem:[%s1609_s15 + $0xf8] sm:$0xff]  ;;  %s216_s15 = sand.u32 1, %s1496_s19  }
  0xc1   : > { %1100 = vmatmul.mubr.f32.vlgmr.msra.gmra.mxu1 %v884_v32  ;;  %v282_v47 = vpop.permute.xlu1 %281  ;;  %v827_v58 = vadd.f32 %v1900_v43, %v751_v37  ;;  %v857_v63 = vmax.f32 %v793_v48, 0.0  ;;  %v826_v0 = vadd.f32 %v1898_v42, %v750_v46  ;;  %v856_v16 = vmax.f32 %v792_v56, 0.0  ;;  %s1292_s23 = sshll.u32 %s216_s15, 8  ;;  %s2193_s11 = scalar_lea.sflag [#allocation3], %s216_s15 }
  0xc2   : > { %v748_v50 = vadd.f32 %v684_v34, %v474_v39  ;;  %v749_v51 = vadd.f32 %v685_v35, %v475_v40  ;;  %1440 = vset.pattern.permute.xlu1 %v1506_v1  ;;  %1104 = vmatprep.mubr.f32.mxu1 %v887_v33  ;;  %v855_v54 = vmax.f32 %v791_v41, 0.0  ;;  %v854_v55 = vmax.f32 %v790_v44, 0.0  ;;  %s2117_s30 = scalar_lea.vmem [#allocation2], %s1292_s23 }
  0xc3   : > { %v277_v53 = vpop.permute.xlu0 %276  ;;  %559 = vperm.xlu1 %1440, %v240_v13   ;;  %v446_v62 = vmul.f32 %v1881_v28, %v282_v47  ;;  %v447_v10 = vmul.f32 %v1883_v29, %v282_v47  ;;  %v891_v17 = vmax.f32 %v827_v58, 0.0  ;;  %v658_v31 = vmul.f32 %v1876_v26, %v1859_v4  ;;  %s1226_s7 = sshll.u32 %s2117_s30, 4  ;;  %s2187_s7 = int_to_ptr.vmem [resolvable:$true] %s1226_s7 }
  0xc4   : > { %v444_v59 = vmul.f32 %v1881_v28, %v277_v53  ;;  %v445_v60 = vmul.f32 %v1883_v29, %v277_v53  ;;  %v825_v3 = vadd.f32 %v1900_v43, %v749_v51  ;;  %v824_v61 = vadd.f32 %v1898_v42, %v748_v50  ;;  %1024 = vmatprep.mubr.f32.mxu0 %v855_v54  ;;  %s1444_s22 = scalar_lea.vmem %s2187_s7, 4096  ;;  %p1451_p0 = scmp.lt.s32.totalorder %s2187_s7, %s1449_s13 }
  0xc5   : > { %1105 = vmatmul.mubr.f32.gmra.mxu1 %v886_v52  ;;  %1025 = vmatmul.mubr.f32.gmra.mxu0 %v854_v55  ;;  %v890_v39 = vmax.f32 %v826_v0, 0.0  ;;  %p1445_p11 = scmp.ne.s32.totalorder %s2187_s7, %s1444_s22  ;;  %p1452_p1 = scmp.lt.s32.totalorder %s1450_s14, %s1444_s22 }
  0xc6   : > { %v718_v2 = vadd.f32 %v654_v45, %v444_v59  ;;  %v719_v5 = vadd.f32 %v655_v49, %v445_v60  ;;  %v520_v6 = vpop.permute.xlu1 %519  ;;  %v889_v8 = vmax.f32 %v825_v3, 0.0  ;;  %v888_v9 = vmax.f32 %v824_v61, 0.0  ;;  %1029 = vmatprep.mubr.f32.mxu0 %v857_v63 }
  0xc7   : > { %v656_v12 = vmul.f32 %v1876_v26, %v520_v6  ;;  %v657_v13 = vmul.f32 %v1878_v27, %v520_v6  ;;  %v362_v14 = vpop.permute.xlu0 %361  ;;  %623 = vperm.xlu1 %1440, %v1838_v57   ;;  %v659_v57 = vmul.f32 %v1878_v27, %v1859_v4  ;;  %p1446_p12 = pnand %p1445_p11, %p1580_p5  ;;  %p1453_p2 = por %p1452_p1, %p1451_p0 }
  0xc8   : > { %1109 = vmatprep.mubr.f32.mxu1 %v889_v8  ;;  %v795_v18 = vadd.f32 %v1900_v43, %v719_v5  ;;  %v794_v20 = vadd.f32 %v1898_v42, %v718_v2  ;;  %v478_v23 = vmul.f32 %v1881_v28, %v362_v14  ;;  %v479_v24 = vmul.f32 %v1883_v29, %v362_v14 }
  0xc9   : > { %v720_v21 = vadd.f32 %v656_v12, %v446_v62  ;;  %v721_v22 = vadd.f32 %v657_v13, %v447_v10  ;;  %1110 = vmatmul.mubr.f32.gmra.mxu1 %v888_v9  ;;  %1030 = vmatmul.mubr.f32.gmra.mxu0 %v856_v16  ;;  %v663_v5 = vmul.f32 %v1878_v27, %v1862_v7  ;;  %p1447_p13 = pneg %p1446_p12 }
  0xca   : > { %1114 = vmatprep.mubr.f32.mxu1 %v891_v17  ;;  %v584_v32 = vpop.permute.xlu1 %583  ;;  %v859_v34 = vmax.f32 %v795_v18, 0.0  ;;  %v858_v35 = vmax.f32 %v794_v20, 0.0  ;;  %v662_v14 = vmul.f32 %v1876_v26, %v1862_v7 }
  0xcb   : > { %v688_v36 = vmul.f32 %v1876_v26, %v584_v32  ;;  %v689_v37 = vmul.f32 %v1878_v27, %v584_v32  ;;  %v287_v38 = vpop.permute.xlu0 %286  ;;  %1441 = vset.pattern.permute.xlu1 %v1508_v15  ;;  %v797_v40 = vadd.f32 %v1900_v43, %v721_v22  ;;  %v796_v4 = vadd.f32 %v1898_v42, %v720_v21  ;;  %p1454_p3 = pnand %p1453_p2, %p1447_p13 }
  0xcc   : > { %v448_v41 = vmul.f32 %v1881_v28, %v287_v38  ;;  %v449_v44 = vmul.f32 %v1883_v29, %v287_v38  ;;  %416 = vperm.xlu1 %1441, %v257_v30   ;;  %1034 = vmatprep.mubr.f32.mxu0 %v859_v34 }
  0xcd   : > { %v752_v45 = vadd.f32 %v688_v36, %v478_v23  ;;  %v753_v46 = vadd.f32 %v689_v37, %v479_v24  ;;  %1115 = vmatmul.mubr.f32.gmra.mxu1 %v890_v39  ;;  %v861_v47 = vmax.f32 %v797_v40, 0.0  ;;  %1035 = vmatmul.mubr.f32.gmra.mxu0 %v858_v35  ;;  %v860_v51 = vmax.f32 %v796_v4, 0.0 }
  0xce   : > { %v722_v33 = vadd.f32 %v658_v31, %v448_v41  ;;  %v723_v48 = vadd.f32 %v659_v57, %v449_v44 }
  0xcf   : > { %1039 = vmatprep.mubr.f32.mxu0 %v861_v47  ;;  %v367_v15 = vpop.permute.xlu1 %366  ;;  %v829_v49 = vadd.f32 %v1900_v43, %v753_v46  ;;  %v828_v50 = vadd.f32 %v1898_v42, %v752_v45  ;;  %v372_v52 = vpop.permute.xlu0 %371 }
  0xd0   : > { %1443 = vset.pattern.permute.xlu1 %v1506_v1  ;;  %v799_v55 = vadd.f32 %v1900_v43, %v723_v48  ;;  %v798_v56 = vadd.f32 %v1898_v42, %v722_v33  ;;  %v480_v3 = vmul.f32 %v1881_v28, %v367_v15  ;;  %v481_v61 = vmul.f32 %v1883_v29, %v367_v15 }
  0xd1   : > { %627 = vperm.xlu1 %1443, %v257_v30   ;;  %v893_v53 = vmax.f32 %v829_v49, 0.0  ;;  %v892_v54 = vmax.f32 %v828_v50, 0.0  ;;  %1040 = vmatmul.mubr.f32.gmra.mxu0 %v860_v51  ;;  %v482_v31 = vmul.f32 %v1881_v28, %v372_v52  ;;  %v483_v7 = vmul.f32 %v1883_v29, %v372_v52 }
  0xd2   : > { %v863_v58 = vmax.f32 %v799_v55, 0.0  ;;  %v862_v59 = vmax.f32 %v798_v56, 0.0 }
  0xd3   : > { %1119 = vmatprep.mubr.f32.mxu1 %v893_v53  ;;  %v297_v63 = vpop.permute.xlu0 %296 }
  0xd4   : > { %1120 = vmatmul.mubr.f32.gmra.mxu1 %v892_v54  ;;  %v588_v60 = vpop.permute.xlu1 %587  ;;  %1044 = vmatprep.mubr.f32.mxu0 %v863_v58  ;;  %v453_v6 = vmul.f32 %v1883_v29, %v297_v63  ;;  %v452_v16 = vmul.f32 %v1881_v28, %v297_v63 }
  0xd5   : > { %v690_v1 = vmul.f32 %v1876_v26, %v588_v60  ;;  %v691_v62 = vmul.f32 %v1878_v27, %v588_v60  ;;  %1045 = vmatmul.mubr.f32.gmra.mxu0 %v862_v59 }
  0xd6   : > { %v727_v17 = vadd.f32 %v663_v5, %v453_v6  ;;  %v726_v24 = vadd.f32 %v662_v14, %v452_v16 }
  0xd7   : > { %v754_v0 = vadd.f32 %v690_v1, %v480_v3  ;;  %v755_v2 = vadd.f32 %v691_v62, %v481_v61  ;;  %v382_v50 = vpop.permute.xlu0 %381  ;;  %v667_v1 = vmul.f32 %v1878_v27, %v1866_v11 }
  0xd8   : > { %v803_v30 = vadd.f32 %v1900_v43, %v727_v17  ;;  %v802_v40 = vadd.f32 %v1898_v42, %v726_v24  ;;  %v486_v14 = vmul.f32 %v1881_v28, %v382_v50  ;;  %v487_v16 = vmul.f32 %v1883_v29, %v382_v50 }
  0xd9   : > { %v292_v8 = vpop.permute.xlu1 %291  ;;  %v831_v9 = vadd.f32 %v1900_v43, %v755_v2  ;;  %v830_v10 = vadd.f32 %v1898_v42, %v754_v0  ;;  %v666_v2 = vmul.f32 %v1876_v26, %v1866_v11 }
  0xda   : > { %v450_v20 = vmul.f32 %v1881_v28, %v292_v8  ;;  %v451_v21 = vmul.f32 %v1883_v29, %v292_v8  ;;  %v867_v39 = vmax.f32 %v803_v30, 0.0  ;;  %v866_v48 = vmax.f32 %v802_v40, 0.0 }
  0xdb   : > { %v895_v12 = vmax.f32 %v831_v9, 0.0  ;;  %v894_v13 = vmax.f32 %v830_v10, 0.0  ;;  %v307_v59 = vpop.permute.xlu0 %306 }
  0xdc   : > { %v457_v62 = vmul.f32 %v1883_v29, %v307_v59  ;;  %v456_v5 = vmul.f32 %v1881_v28, %v307_v59 }
  0xdd   : > { %1124 = vmatprep.mubr.f32.mxu1 %v895_v12 }
  0xde   : > { %1125 = vmatmul.mubr.f32.gmra.mxu1 %v894_v13  ;;  %v528_v18 = vpop.permute.xlu1 %527  ;;  %v731_v6 = vadd.f32 %v667_v1, %v457_v62  ;;  %v730_v11 = vadd.f32 %v666_v2, %v456_v5 }
  0xdf   : > { %v660_v22 = vmul.f32 %v1876_v26, %v528_v18  ;;  %v661_v23 = vmul.f32 %v1878_v27, %v528_v18 }
  0xe1   : > { %v724_v57 = vadd.f32 %v660_v22, %v450_v20  ;;  %v725_v32 = vadd.f32 %v661_v23, %v451_v21  ;;  %v807_v21 = vadd.f32 %v1900_v43, %v731_v6 }
  0xe2   : > { %v592_v34 = vpop.permute.xlu1 %591 }
  0xe3   : > { %v692_v35 = vmul.f32 %v1876_v26, %v592_v34  ;;  %v693_v36 = vmul.f32 %v1878_v27, %v592_v34  ;;  %v801_v37 = vadd.f32 %v1900_v43, %v725_v32  ;;  %v800_v38 = vadd.f32 %v1898_v42, %v724_v57 }
  0xe4   : > { %v806_v34 = vadd.f32 %v1898_v42, %v730_v11 }
  0xe5   : > { %v756_v41 = vadd.f32 %v692_v35, %v482_v31  ;;  %v757_v44 = vadd.f32 %v693_v36, %v483_v7  ;;  %v865_v4 = vmax.f32 %v801_v37, 0.0  ;;  %v864_v45 = vmax.f32 %v800_v38, 0.0 }
  0xe6   : > { %v871_v36 = vmax.f32 %v807_v21, 0.0 }
  0xe7   : > { %1049 = vmatprep.mubr.f32.mxu0 %v865_v4  ;;  %v377_v46 = vpop.permute.xlu1 %376  ;;  %v833_v47 = vadd.f32 %v1900_v43, %v757_v44  ;;  %v832_v33 = vadd.f32 %v1898_v42, %v756_v41  ;;  %v870_v41 = vmax.f32 %v806_v34, 0.0  ;;  %v392_v44 = vpop.permute.xlu0 %391 }
  0xe8   : > { %1050 = vmatmul.mubr.f32.gmra.mxu0 %v864_v45  ;;  %v484_v52 = vmul.f32 %v1881_v28, %v377_v46  ;;  %v485_v53 = vmul.f32 %v1883_v29, %v377_v46  ;;  %v490_v5 = vmul.f32 %v1881_v28, %v392_v44  ;;  %v491_v6 = vmul.f32 %v1883_v29, %v392_v44 }
  0xe9   : > { %v897_v15 = vmax.f32 %v833_v47, 0.0  ;;  %v896_v49 = vmax.f32 %v832_v33, 0.0  ;;  %1054 = vmatprep.mubr.f32.mxu0 %v867_v39 }
  0xeb   : > { %1129 = vmatprep.mubr.f32.mxu1 %v897_v15 }
  0xec   : > { %1130 = vmatmul.mubr.f32.gmra.mxu1 %v896_v49  ;;  %v596_v51 = vpop.permute.xlu1 %595  ;;  %1055 = vmatmul.mubr.f32.gmra.mxu0 %v866_v48  ;;  %v317_v49 = vpop.permute.xlu0 %316 }
  0xed   : > { %v694_v54 = vmul.f32 %v1876_v26, %v596_v51  ;;  %v695_v55 = vmul.f32 %v1878_v27, %v596_v51  ;;  %v460_v59 = vmul.f32 %v1881_v28, %v317_v49 }
  0xef   : > { %v758_v56 = vadd.f32 %v694_v54, %v484_v52  ;;  %v759_v58 = vadd.f32 %v695_v55, %v485_v53  ;;  %v671_v53 = vmul.f32 %v1878_v27, %v1872_v19  ;;  %v461_v54 = vmul.f32 %v1883_v29, %v317_v49 }
  0xf1   : > { %v302_v60 = vpop.permute.xlu1 %301  ;;  %v835_v3 = vadd.f32 %v1900_v43, %v759_v58  ;;  %v834_v61 = vadd.f32 %v1898_v42, %v758_v56  ;;  %v670_v58 = vmul.f32 %v1876_v26, %v1872_v19 }
  0xf2   : > { %v454_v9 = vmul.f32 %v1881_v28, %v302_v60  ;;  %v455_v10 = vmul.f32 %v1883_v29, %v302_v60  ;;  %v735_v60 = vadd.f32 %v671_v53, %v461_v54 }
  0xf3   : > { %v899_v63 = vmax.f32 %v835_v3, 0.0  ;;  %v898_v0 = vmax.f32 %v834_v61, 0.0  ;;  %v734_v19 = vadd.f32 %v670_v58, %v460_v59 }
  0xf5   : > { %1134 = vmatprep.mubr.f32.mxu1 %v899_v63 }
  0xf6   : > { %1135 = vmatmul.mubr.f32.gmra.mxu1 %v898_v0  ;;  %v536_v8 = vpop.permute.xlu1 %535 }
  0xf7   : > { %v664_v12 = vmul.f32 %v1876_v26, %v536_v8  ;;  %v665_v13 = vmul.f32 %v1878_v27, %v536_v8 }
  0xf9   : > { %v728_v17 = vadd.f32 %v664_v12, %v454_v9  ;;  %v729_v18 = vadd.f32 %v665_v13, %v455_v10  ;;  %v811_v9 = vadd.f32 %v1900_v43, %v735_v60 }
  0xfa   : > { %v600_v20 = vpop.permute.xlu1 %599 }
  0xfb   : > { %v696_v22 = vmul.f32 %v1876_v26, %v600_v20  ;;  %v697_v23 = vmul.f32 %v1878_v27, %v600_v20  ;;  %v805_v24 = vadd.f32 %v1900_v43, %v729_v18  ;;  %v804_v30 = vadd.f32 %v1898_v42, %v728_v17 }
  0xfc   : > { %v810_v20 = vadd.f32 %v1898_v42, %v734_v19 }
  0xfd   : > { %v760_v31 = vadd.f32 %v696_v22, %v486_v14  ;;  %v761_v7 = vadd.f32 %v697_v23, %v487_v16  ;;  %v869_v57 = vmax.f32 %v805_v24, 0.0  ;;  %v868_v32 = vmax.f32 %v804_v30, 0.0  ;;  %v402_v30 = vpop.permute.xlu0 %401 }
  0xfe   : > { %v875_v22 = vmax.f32 %v811_v9, 0.0  ;;  %v494_v58 = vmul.f32 %v1881_v28, %v402_v30  ;;  %v495_v59 = vmul.f32 %v1883_v29, %v402_v30 }
  0xff   : > { %1059 = vmatprep.mubr.f32.mxu0 %v869_v57  ;;  %v387_v35 = vpop.permute.xlu1 %386  ;;  %v837_v37 = vadd.f32 %v1900_v43, %v761_v7  ;;  %v836_v38 = vadd.f32 %v1898_v42, %v760_v31  ;;  %v874_v57 = vmax.f32 %v810_v20, 0.0 }
 0x100   : > { %1060 = vmatmul.mubr.f32.gmra.mxu0 %v868_v32  ;;  %v488_v45 = vmul.f32 %v1881_v28, %v387_v35  ;;  %v489_v46 = vmul.f32 %v1883_v29, %v387_v35 }
 0x101   : > { %1064 = vmatprep.mubr.f32.mxu0 %v871_v36  ;;  %v901_v39 = vmax.f32 %v837_v37, 0.0  ;;  %v900_v40 = vmax.f32 %v836_v38, 0.0  ;;  %v327_v38 = vpop.permute.xlu0 %326 }
 0x103   : > { %1139 = vmatprep.mubr.f32.mxu1 %v901_v39 }
 0x104   : > { %1065 = vmatmul.mubr.f32.gmra.mxu0 %v870_v41  ;;  %1140 = vmatmul.mubr.f32.gmra.mxu1 %v900_v40  ;;  %v604_v4 = vpop.permute.xlu1 %603 }
 0x105   : > { %v698_v47 = vmul.f32 %v1876_v26, %v604_v4  ;;  %v699_v33 = vmul.f32 %v1878_v27, %v604_v4 }
 0x107   : > { %v762_v48 = vadd.f32 %v698_v47, %v488_v45  ;;  %v763_v15 = vadd.f32 %v699_v33, %v489_v46  ;;  %v675_v45 = vmul.f32 %v1878_v27, %v1874_v25  ;;  %v465_v46 = vmul.f32 %v1883_v29, %v327_v38 }
 0x109   : > { %v312_v50 = vpop.permute.xlu1 %311  ;;  %v839_v51 = vadd.f32 %v1900_v43, %v763_v15  ;;  %v838_v52 = vadd.f32 %v1898_v42, %v762_v48  ;;  %v674_v48 = vmul.f32 %v1876_v26, %v1874_v25  ;;  %v464_v15 = vmul.f32 %v1881_v28, %v327_v38 }
 0x10a   : > { %v458_v61 = vmul.f32 %v1881_v28, %v312_v50  ;;  %v459_v1 = vmul.f32 %v1883_v29, %v312_v50  ;;  %v739_v49 = vadd.f32 %v675_v45, %v465_v46 }
 0x10b   : > { %v903_v55 = vmax.f32 %v839_v51, 0.0  ;;  %v902_v56 = vmax.f32 %v838_v52, 0.0  ;;  %v738_v25 = vadd.f32 %v674_v48, %v464_v15 }
 0x10d   : > { %1144 = vmatprep.mubr.f32.mxu1 %v903_v55 }
 0x10e   : > { %1145 = vmatmul.mubr.f32.gmra.mxu1 %v902_v56  ;;  %v544_v3 = vpop.permute.xlu1 %543 }
 0x10f   : > { %v668_v62 = vmul.f32 %v1876_v26, %v544_v3  ;;  %v669_v63 = vmul.f32 %v1878_v27, %v544_v3  ;;  %v815_v3 = vadd.f32 %v1900_v43, %v739_v49 }
 0x111   : > { %v732_v0 = vadd.f32 %v668_v62, %v458_v61  ;;  %v733_v2 = vadd.f32 %v669_v63, %v459_v1  ;;  %v412_v61 = vpop.permute.xlu0 %411 }
 0x112   : > { %v608_v8 = vpop.permute.xlu1 %607  ;;  %v498_v48 = vmul.f32 %v1881_v28, %v412_v61  ;;  %v499_v15 = vmul.f32 %v1883_v29, %v412_v61 }
 0x113   : > { %v700_v10 = vmul.f32 %v1876_v26, %v608_v8  ;;  %v701_v12 = vmul.f32 %v1878_v27, %v608_v8  ;;  %v809_v13 = vadd.f32 %v1900_v43, %v733_v2  ;;  %v808_v14 = vadd.f32 %v1898_v42, %v732_v0 }
 0x114   : > { %v814_v8 = vadd.f32 %v1898_v42, %v738_v25 }
 0x115   : > { %v764_v16 = vadd.f32 %v700_v10, %v490_v5  ;;  %v765_v17 = vadd.f32 %v701_v12, %v491_v6  ;;  %v873_v18 = vmax.f32 %v809_v13, 0.0  ;;  %v872_v11 = vmax.f32 %v808_v14, 0.0  ;;  %v337_v14 = vpop.permute.xlu0 %336 }
 0x116   : > { %v879_v10 = vmax.f32 %v815_v3, 0.0  ;;  %v468_v38 = vmul.f32 %v1881_v28, %v337_v14 }
 0x117   : > { %1069 = vmatprep.mubr.f32.mxu0 %v873_v18  ;;  %v397_v21 = vpop.permute.xlu1 %396  ;;  %v841_v23 = vadd.f32 %v1900_v43, %v765_v17  ;;  %v840_v24 = vadd.f32 %v1898_v42, %v764_v16  ;;  %v878_v18 = vmax.f32 %v814_v8, 0.0 }
 0x118   : > { %1070 = vmatmul.mubr.f32.gmra.mxu0 %v872_v11  ;;  %v492_v34 = vmul.f32 %v1881_v28, %v397_v21  ;;  %v493_v35 = vmul.f32 %v1883_v29, %v397_v21 }
 0x119   : > { %1074 = vmatprep.mubr.f32.mxu0 %v875_v22  ;;  %v905_v31 = vmax.f32 %v841_v23, 0.0  ;;  %v904_v7 = vmax.f32 %v840_v24, 0.0  ;;  %v564_v24 = vpop.permute.xlu0 %563 }
 0x11b   : > { %1149 = vmatprep.mubr.f32.mxu1 %v905_v31 }
 0x11c   : > { %1075 = vmatmul.mubr.f32.gmra.mxu0 %v874_v57  ;;  %1150 = vmatmul.mubr.f32.gmra.mxu1 %v904_v7  ;;  %v612_v32 = vpop.permute.xlu1 %611 }
 0x11d   : > { %v702_v36 = vmul.f32 %v1876_v26, %v612_v32  ;;  %v703_v37 = vmul.f32 %v1878_v27, %v612_v32 }
 0x11f   : > { %v766_v39 = vadd.f32 %v702_v36, %v492_v34  ;;  %v767_v40 = vadd.f32 %v703_v37, %v493_v35  ;;  %v469_v34 = vmul.f32 %v1883_v29, %v337_v14  ;;  %v679_v35 = vmul.f32 %v1878_v27, %v564_v24 }
 0x121   : > { %v322_v41 = vpop.permute.xlu1 %321  ;;  %v843_v44 = vadd.f32 %v1900_v43, %v767_v40  ;;  %v842_v4 = vadd.f32 %v1898_v42, %v766_v39  ;;  %v678_v39 = vmul.f32 %v1876_v26, %v564_v24  ;;  %v743_v40 = vadd.f32 %v679_v35, %v469_v34 }
 0x122   : > { %v462_v51 = vmul.f32 %v1881_v28, %v322_v41  ;;  %v463_v52 = vmul.f32 %v1883_v29, %v322_v41 }
 0x123   : > { %v907_v47 = vmax.f32 %v843_v44, 0.0  ;;  %v906_v33 = vmax.f32 %v842_v4, 0.0  ;;  %v742_v49 = vadd.f32 %v678_v39, %v468_v38 }
 0x125   : > { %1154 = vmatprep.mubr.f32.mxu1 %v907_v47 }
 0x126   : > { %1155 = vmatmul.mubr.f32.gmra.mxu1 %v906_v33  ;;  %v552_v50 = vpop.permute.xlu1 %551 }
 0x127   : > { %v672_v53 = vmul.f32 %v1876_v26, %v552_v50  ;;  %v673_v54 = vmul.f32 %v1878_v27, %v552_v50 }
 0x129   : > { %v736_v55 = vadd.f32 %v672_v53, %v462_v51  ;;  %v737_v56 = vadd.f32 %v673_v54, %v463_v52  ;;  %v819_v51 = vadd.f32 %v1900_v43, %v743_v40 }
 0x12a   : > { %v616_v60 = vpop.permute.xlu1 %615 }
 0x12b   : > { %v704_v1 = vmul.f32 %v1876_v26, %v616_v60  ;;  %v705_v62 = vmul.f32 %v1878_v27, %v616_v60  ;;  %v813_v63 = vadd.f32 %v1900_v43, %v737_v56  ;;  %v812_v0 = vadd.f32 %v1898_v42, %v736_v55 }
 0x12c   : > { %v818_v60 = vadd.f32 %v1898_v42, %v742_v49  ;;  %v883_v61 = vmax.f32 %v819_v51, 0.0 }
 0x12d   : > { %v768_v2 = vadd.f32 %v704_v1, %v494_v58  ;;  %v769_v5 = vadd.f32 %v705_v62, %v495_v59  ;;  %v877_v6 = vmax.f32 %v813_v63, 0.0  ;;  %v876_v19 = vmax.f32 %v812_v0, 0.0 }
 0x12f   : > { %1079 = vmatprep.mubr.f32.mxu0 %v877_v6  ;;  %v407_v9 = vpop.permute.xlu1 %406  ;;  %v845_v12 = vadd.f32 %v1900_v43, %v769_v5  ;;  %v844_v13 = vadd.f32 %v1898_v42, %v768_v2  ;;  %v882_v2 = vmax.f32 %v818_v60, 0.0 }
 0x130   : > { %1080 = vmatmul.mubr.f32.gmra.mxu0 %v876_v19  ;;  %v496_v20 = vmul.f32 %v1881_v28, %v407_v9  ;;  %v497_v21 = vmul.f32 %v1883_v29, %v407_v9 }
 0x131   : > { %1084 = vmatprep.mubr.f32.mxu0 %v879_v10  ;;  %v909_v16 = vmax.f32 %v845_v12, 0.0  ;;  %v908_v17 = vmax.f32 %v844_v13, 0.0 }
 0x133   : > { %1159 = vmatprep.mubr.f32.mxu1 %v909_v16 }
 0x134   : > { %1085 = vmatmul.mubr.f32.gmra.mxu0 %v878_v18  ;;  %1160 = vmatmul.mubr.f32.gmra.mxu1 %v908_v17  ;;  %v620_v11 = vpop.permute.xlu1 %619 }
 0x135   : > { %v706_v22 = vmul.f32 %v1876_v26, %v620_v11  ;;  %v707_v23 = vmul.f32 %v1878_v27, %v620_v11 }
 0x137   : > { %v770_v30 = vadd.f32 %v706_v22, %v496_v20  ;;  %v771_v31 = vadd.f32 %v707_v23, %v497_v21 }
 0x139   : > { %v332_v7 = vpop.permute.xlu1 %331  ;;  %v847_v57 = vadd.f32 %v1900_v43, %v771_v31  ;;  %v846_v32 = vadd.f32 %v1898_v42, %v770_v30 }
 0x13a   : > { %v466_v44 = vmul.f32 %v1881_v28, %v332_v7  ;;  %v467_v4 = vmul.f32 %v1883_v29, %v332_v7 }
 0x13b   : > { %v911_v36 = vmax.f32 %v847_v57, 0.0  ;;  %v910_v37 = vmax.f32 %v846_v32, 0.0 }
 0x13d   : > { %1164 = vmatprep.mubr.f32.mxu1 %v911_v36 }
 0x13e   : > { %1165 = vmatmul.mubr.f32.gmra.mxu1 %v910_v37  ;;  %v560_v41 = vpop.permute.xlu1 %559 }
 0x13f   : > { %v676_v45 = vmul.f32 %v1876_v26, %v560_v41  ;;  %v677_v46 = vmul.f32 %v1878_v27, %v560_v41 }
 0x141   : > { %v740_v47 = vadd.f32 %v676_v45, %v466_v44  ;;  %v741_v33 = vadd.f32 %v677_v46, %v467_v4 }
 0x142   : > { %v624_v50 = vpop.permute.xlu1 %623 }
 0x143   : > { %v708_v52 = vmul.f32 %v1876_v26, %v624_v50  ;;  %v709_v53 = vmul.f32 %v1878_v27, %v624_v50  ;;  %v817_v54 = vadd.f32 %v1900_v43, %v741_v33  ;;  %v816_v55 = vadd.f32 %v1898_v42, %v740_v47 }
 0x145   : > { %v772_v56 = vadd.f32 %v708_v52, %v498_v48  ;;  %v773_v58 = vadd.f32 %v709_v53, %v499_v15  ;;  %v881_v59 = vmax.f32 %v817_v54, 0.0  ;;  %v880_v25 = vmax.f32 %v816_v55, 0.0 }
 0x147   : > { %1089 = vmatprep.mubr.f32.mxu0 %v881_v59  ;;  %v417_v3 = vpop.permute.xlu1 %416  ;;  %v849_v1 = vadd.f32 %v1900_v43, %v773_v58  ;;  %v848_v62 = vadd.f32 %v1898_v42, %v772_v56 }
 0x148   : > { %1090 = vmatmul.mubr.f32.gmra.mxu0 %v880_v25  ;;  %v500_v6 = vmul.f32 %v1881_v28, %v417_v3  ;;  %v501_v19 = vmul.f32 %v1883_v29, %v417_v3  ;;  %v2114_v28 = vld [vmem:[%s2237_s4] ss:$0 sm:$0xff] }
 0x149   : > { %1094 = vmatprep.mubr.f32.mxu0 %v883_v61  ;;  %v913_v63 = vmax.f32 %v849_v1, 0.0  ;;  %v912_v0 = vmax.f32 %v848_v62, 0.0 }
 0x14b   : > { %1169 = vmatprep.mubr.f32.mxu1 %v913_v63 }
 0x14c   : > { %1095 = vmatmul.mubr.f32.gmra.mxu0 %v882_v2  ;;  %1170 = vmatmul.mubr.f32.gmra.mxu1 %v912_v0  ;;  %v628_v5 = vpop.permute.xlu1 %627 }
 0x14d   : > { %v710_v8 = vmul.f32 %v1876_v26, %v628_v5  ;;  %v711_v9 = vmul.f32 %v1878_v27, %v628_v5 }
 0x14f   : > { %v774_v10 = vadd.f32 %v710_v8, %v500_v6  ;;  %v775_v12 = vadd.f32 %v711_v9, %v501_v19 }
 0x151   : > { %v851_v13 = vadd.f32 %v1900_v43, %v775_v12  ;;  %v850_v14 = vadd.f32 %v1898_v42, %v774_v10 }
 0x153   : > { %v915_v16 = vmax.f32 %v851_v13, 0.0  ;;  %v914_v17 = vmax.f32 %v850_v14, 0.0 }
 0x155   : > { %1174 = vmatprep.mubr.f32.mxu1 %v915_v16 }
 0x156   : > { %1175 = vmatmul.mubr.f32.gmra.mxu1 %v914_v17 }
 0x17d   : > { %v1021_v26 = vpop.f32.mrf.mxu0 }
 0x17e   : > { %v1022_v27 = vadd.f32 %v2114_v28, %v1021_v26 }
 0x17f   : > { %v1023_v29 = vpop.f32.mrf.mxu0 }
 0x180   : > { %1180 = vst [vmem:[%s2117_s30] sm:$0xff] %v1022_v27 }
 0x181   : > { %v1101_v42 = vpop.f32.mrf.mxu1 }
 0x182   : > { %v1102_v43 = vadd.f32 %v2114_v28, %v1101_v42 }
 0x183   : > { %v1103_v18 = vpop.f32.mrf.mxu1 }
 0x184   : > { %1196 = vst [vmem:[%s2117_s30 + $0x80] sm:$0xff] %v1102_v43 }
 0x185   : > { %v1106_v11 = vpop.f32.mrf.mxu1  ;;  %v1026_v20 = vpop.f32.mrf.mxu0 }
 0x186   : > { %v1107_v21 = vadd.f32 %v2114_v28, %v1106_v11  ;;  %v1027_v22 = vadd.f32 %v2114_v28, %v1026_v20 }
 0x187   : > { %v1108_v23 = vpop.f32.mrf.mxu1  ;;  %v1028_v24 = vpop.f32.mrf.mxu0 }
 0x188   : > { %1197 = vst [vmem:[%s2117_s30 + $0x88] sm:$0xff] %v1107_v21  ;;  %1181 = vst [vmem:[%s2117_s30 + $0x8] sm:$0xff] %v1027_v22 }
 0x189   : > { %v1111_v30 = vpop.f32.mrf.mxu1  ;;  %v1031_v31 = vpop.f32.mrf.mxu0 }
 0x18a   : > { %v1112_v7 = vadd.f32 %v2114_v28, %v1111_v30  ;;  %v1032_v57 = vadd.f32 %v2114_v28, %v1031_v31 }
 0x18b   : > { %v1113_v32 = vpop.f32.mrf.mxu1  ;;  %v1033_v34 = vpop.f32.mrf.mxu0 }
 0x18c   : > { %1198 = vst [vmem:[%s2117_s30 + $0x90] sm:$0xff] %v1112_v7  ;;  %1182 = vst [vmem:[%s2117_s30 + $0x10] sm:$0xff] %v1032_v57 }
 0x18d   : > { %v1116_v35 = vpop.f32.mrf.mxu1  ;;  %v1036_v36 = vpop.f32.mrf.mxu0 }
 0x18e   : > { %v1117_v37 = vadd.f32 %v2114_v28, %v1116_v35  ;;  %v1037_v38 = vadd.f32 %v2114_v28, %v1036_v36 }
 0x18f   : > { %v1118_v39 = vpop.f32.mrf.mxu1  ;;  %v1038_v40 = vpop.f32.mrf.mxu0 }
 0x190   : > { %1199 = vst [vmem:[%s2117_s30 + $0x98] sm:$0xff] %v1117_v37  ;;  %1183 = vst [vmem:[%s2117_s30 + $0x18] sm:$0xff] %v1037_v38 }
 0x191   : > { %v1041_v41 = vpop.f32.mrf.mxu0 }
 0x192   : > { %v1042_v44 = vadd.f32 %v2114_v28, %v1041_v41 }
 0x193   : > { %v1043_v4 = vpop.f32.mrf.mxu0 }
 0x194   : > { %v1121_v45 = vpop.f32.mrf.mxu1  ;;  %1184 = vst [vmem:[%s2117_s30 + $0x20] sm:$0xff] %v1042_v44 }
 0x195   : > { %v1122_v46 = vadd.f32 %v2114_v28, %v1121_v45  ;;  %v1046_v33 = vpop.f32.mrf.mxu0 }
 0x196   : > { %v1123_v47 = vpop.f32.mrf.mxu1  ;;  %v1047_v48 = vadd.f32 %v2114_v28, %v1046_v33 }
 0x197   : > { %1200 = vst [vmem:[%s2117_s30 + $0xa0] sm:$0xff] %v1122_v46  ;;  %v1048_v15 = vpop.f32.mrf.mxu0 }
 0x198   : > { %1185 = vst [vmem:[%s2117_s30 + $0x28] sm:$0xff] %v1047_v48 }
 0x19e   : > { %v1126_v49 = vpop.f32.mrf.mxu1 }
 0x19f   : > { %v1127_v50 = vadd.f32 %v2114_v28, %v1126_v49 }
 0x1a0   : > { %v1128_v51 = vpop.f32.mrf.mxu1 }
 0x1a1   : > { %1201 = vst [vmem:[%s2117_s30 + $0xa8] sm:$0xff] %v1127_v50 }
 0x1a8   : > { %v1051_v52 = vpop.f32.mrf.mxu0 }
 0x1a9   : > { %v1052_v53 = vadd.f32 %v2114_v28, %v1051_v52 }
 0x1aa   : > { %v1053_v54 = vpop.f32.mrf.mxu0 }
 0x1ab   : > { %1186 = vst [vmem:[%s2117_s30 + $0x30] sm:$0xff] %v1052_v53 }
 0x1ac   : > { %v1131_v55 = vpop.f32.mrf.mxu1  ;;  %v1056_v56 = vpop.f32.mrf.mxu0 }
 0x1ad   : > { %v1132_v58 = vadd.f32 %v2114_v28, %v1131_v55  ;;  %v1057_v59 = vadd.f32 %v2114_v28, %v1056_v56 }
 0x1ae   : > { %v1133_v25 = vpop.f32.mrf.mxu1  ;;  %v1058_v60 = vpop.f32.mrf.mxu0 }
 0x1af   : > { %1202 = vst [vmem:[%s2117_s30 + $0xb0] sm:$0xff] %v1132_v58  ;;  %1187 = vst [vmem:[%s2117_s30 + $0x38] sm:$0xff] %v1057_v59 }
 0x1b6   : > { %v1136_v3 = vpop.f32.mrf.mxu1 }
 0x1b7   : > { %v1137_v61 = vadd.f32 %v2114_v28, %v1136_v3 }
 0x1b8   : > { %v1138_v1 = vpop.f32.mrf.mxu1 }
 0x1b9   : > { %1203 = vst [vmem:[%s2117_s30 + $0xb8] sm:$0xff] %v1137_v61 }
 0x1c0   : > { %v1061_v62 = vpop.f32.mrf.mxu0 }
 0x1c1   : > { %v1062_v63 = vadd.f32 %v2114_v28, %v1061_v62 }
 0x1c2   : > { %v1063_v0 = vpop.f32.mrf.mxu0 }
 0x1c3   : > { %1188 = vst [vmem:[%s2117_s30 + $0x40] sm:$0xff] %v1062_v63 }
 0x1c4   : > { %v1066_v2 = vpop.f32.mrf.mxu0  ;;  %v1141_v5 = vpop.f32.mrf.mxu1 }
 0x1c5   : > { %v1067_v6 = vadd.f32 %v2114_v28, %v1066_v2  ;;  %v1142_v19 = vadd.f32 %v2114_v28, %v1141_v5 }
 0x1c6   : > { %v1068_v8 = vpop.f32.mrf.mxu0  ;;  %v1143_v9 = vpop.f32.mrf.mxu1 }
 0x1c7   : > { %1189 = vst [vmem:[%s2117_s30 + $0x48] sm:$0xff] %v1067_v6  ;;  %1204 = vst [vmem:[%s2117_s30 + $0xc0] sm:$0xff] %v1142_v19 }
 0x1ce   : > { %v1146_v10 = vpop.f32.mrf.mxu1 }
 0x1cf   : > { %v1147_v12 = vadd.f32 %v2114_v28, %v1146_v10 }
 0x1d0   : > { %v1148_v13 = vpop.f32.mrf.mxu1 }
 0x1d1   : > { %1205 = vst [vmem:[%s2117_s30 + $0xc8] sm:$0xff] %v1147_v12 }
 0x1d8   : > { %v1071_v14 = vpop.f32.mrf.mxu0 }
 0x1d9   : > { %v1072_v16 = vadd.f32 %v2114_v28, %v1071_v14 }
 0x1da   : > { %v1073_v17 = vpop.f32.mrf.mxu0 }
 0x1db   : > { %1190 = vst [vmem:[%s2117_s30 + $0x50] sm:$0xff] %v1072_v16 }
 0x1dc   : > { %v1076_v26 = vpop.f32.mrf.mxu0  ;;  %v1151_v27 = vpop.f32.mrf.mxu1 }
 0x1dd   : > { %v1077_v29 = vadd.f32 %v2114_v28, %v1076_v26  ;;  %v1152_v42 = vadd.f32 %v2114_v28, %v1151_v27 }
 0x1de   : > { %v1078_v43 = vpop.f32.mrf.mxu0  ;;  %v1153_v18 = vpop.f32.mrf.mxu1 }
 0x1df   : > { %1191 = vst [vmem:[%s2117_s30 + $0x58] sm:$0xff] %v1077_v29  ;;  %1206 = vst [vmem:[%s2117_s30 + $0xd0] sm:$0xff] %v1152_v42 }
 0x1e6   : > { %v1156_v11 = vpop.f32.mrf.mxu1 }
 0x1e7   : > { %v1157_v20 = vadd.f32 %v2114_v28, %v1156_v11 }
 0x1e8   : > { %v1158_v21 = vpop.f32.mrf.mxu1 }
 0x1e9   : > { %1207 = vst [vmem:[%s2117_s30 + $0xd8] sm:$0xff] %v1157_v20 }
 0x1f0   : > { %v1081_v22 = vpop.f32.mrf.mxu0 }
 0x1f1   : > { %v1082_v23 = vadd.f32 %v2114_v28, %v1081_v22 }
 0x1f2   : > { %v1083_v24 = vpop.f32.mrf.mxu0 }
 0x1f3   : > { %1192 = vst [vmem:[%s2117_s30 + $0x60] sm:$0xff] %v1082_v23 }
 0x1f4   : > { %v1086_v30 = vpop.f32.mrf.mxu0  ;;  %v1161_v31 = vpop.f32.mrf.mxu1 }
 0x1f5   : > { %v1087_v7 = vadd.f32 %v2114_v28, %v1086_v30  ;;  %v1162_v57 = vadd.f32 %v2114_v28, %v1161_v31 }
 0x1f6   : > { %v1088_v32 = vpop.f32.mrf.mxu0  ;;  %v1163_v34 = vpop.f32.mrf.mxu1 }
 0x1f7   : > { %1193 = vst [vmem:[%s2117_s30 + $0x68] sm:$0xff] %v1087_v7  ;;  %1208 = vst [vmem:[%s2117_s30 + $0xe0] sm:$0xff] %v1162_v57 }
 0x1fe   : > { %v1166_v35 = vpop.f32.mrf.mxu1 }
 0x1ff   : > { %v1167_v36 = vadd.f32 %v2114_v28, %v1166_v35 }
 0x200   : > { %v1168_v37 = vpop.f32.mrf.mxu1 }
 0x201   : > { %1209 = vst [vmem:[%s2117_s30 + $0xe8] sm:$0xff] %v1167_v36 }
 0x208   : > { %v1091_v38 = vpop.f32.mrf.mxu0 }
 0x209   : > { %v1092_v39 = vadd.f32 %v2114_v28, %v1091_v38 }
 0x20a   : > { %v1093_v40 = vpop.f32.mrf.mxu0 }
 0x20b   : > { %1194 = vst [vmem:[%s2117_s30 + $0x70] sm:$0xff] %v1092_v39 }
 0x20c   : > { %v1096_v41 = vpop.f32.mrf.mxu0  ;;  %v1171_v44 = vpop.f32.mrf.mxu1 }
 0x20d   : > { %v1097_v4 = vadd.f32 %v2114_v28, %v1096_v41  ;;  %v1172_v45 = vadd.f32 %v2114_v28, %v1171_v44 }
 0x20e   : > { %v1098_v46 = vpop.f32.mrf.mxu0  ;;  %v1173_v47 = vpop.f32.mrf.mxu1 }
 0x20f   : > { %1195 = vst [vmem:[%s2117_s30 + $0x78] sm:$0xff] %v1097_v4  ;;  %1210 = vst [vmem:[%s2117_s30 + $0xf0] sm:$0xff] %v1172_v45 }
 0x216   : > { %v1176_v33 = vpop.f32.mrf.mxu1 }
 0x217   : > { %v1177_v48 = vadd.f32 %v2114_v28, %v1176_v33 }
 0x218   : > { %v1178_v15 = vpop.f32.mrf.mxu1 }
 0x219   : > { %1211 = vst [vmem:[%s2117_s30 + $0xf8] sm:$0xff] %v1177_v48 }
 0x21a   : > { %1457 = shalt.err (!%p1454_p3)
}
 0x21b   : > { %s1458_s16 = scalar_lea.hbm %s2185_s10, 4096  ;;  %s1462_s23 = scalar_lea.hbm %s2238_s5, 16384 }
 0x21c   : > { %p1459_p4 = scmp.ne.s32.totalorder %s2185_s10, %s1458_s16  ;;  %p1463_p9 = scmp.lt.s32.totalorder %s2185_s10, %s2238_s5 }
 0x21d   : > { %p1464_p10 = scmp.lt.s32.totalorder %s1462_s23, %s1458_s16 }
 0x21e   : > { %p1460_p7 = pnand %p1459_p4, %p1580_p5 }
 0x21f   : > { %p1465_p11 = por %p1464_p10, %p1463_p9 }
 0x220   : > { %p1461_p8 = pneg %p1460_p7 }
 0x222   : > { %p1466_p12 = pnand %p1465_p11, %p1461_p8 }
 0x224   : > { %1469 = shalt.err (!%p1466_p12)
}
 0x225   : > { %s1510_s30 = smov 128   ;;  %s1511_s6 = smov 8  }
 0x226   : > { %1366 = dma.vmem_to_hbm [thread:$0]  (%p1580_p5), %s2187_s7, 4096, %s2185_s10, %s2193_s11, %s1510_s30, %s1510_s30, %s1511_s6  }
 0x227 PF: > { %p1372_p13 = scmp.ge.s32.totalorder %s1504_s21, 2  ;;  %s1241_s8 = sand.u32 1, %s1492_s18  }
 0x228   : > { %s1242_s9 = scalar_lea.sflag [#allocation3], %s1241_s8 }
 0x229   : > { %p1369_p0 = pnand %p1372_p13, %p1584_p6 }
 0x22b   : > { %p1370_p1 = pneg %p1369_p0 }
 0x22d   : > { %1487 = dma.done.wait (%p1370_p1), %s1242_s9, 4096  }
 0x22e   : > { %1489 = vsyncadd (%p1370_p1), %s1242_s9, 4294963200  ;;  %p15_p2 = scmp.ge.s32.totalorder %s1567_s24, 6   ;;  %s2241_s18 = smov %s1496_s19 }
 0x22f   : > { %s2242_s19 = smov %s1500_s20  ;;  %s2243_s20 = smov %s1578_s27 }
 0x230   : > { %s2244_s21 = smov %s1567_s24  ;;  %17 = sbr.rel (!%p15_p2) target bundleno = 3 (0x3), region = 75 }
 0x235   :  { %1247 = vsyncpa [#allocation3], 1 }
 0x236   :  { %1249 = vsyncpa [#allocation3 + $0x1], 1 }

</bundles_post_ra>
